<compile_context>
chip_gen: v7x
topology: tpu7x:2x2x1
jax: 0.10.0
libtpu: 0.0.40
codegen_flags: <defaults>
</compile_context>

<pallas_src>
import functools

import jax
import jax.numpy as jnp
from jax.experimental import pallas as pl
from jax.experimental.pallas import tpu as pltpu

_EPS = 1e-6


# ---------------------------------------------------------------------------
# Kernels
# ---------------------------------------------------------------------------
def _single_block_kernel(x_ref, o_ref):
    """Whole (C, N) plane resident in VMEM: per-row min/max + normalize."""
    x = x_ref[...]                                  # native dtype, no tile upcast
    mn = jnp.min(x, axis=-1, keepdims=True)         # (C, 1), exact in native dtype
    mx = jnp.max(x, axis=-1, keepdims=True)         # (C, 1)
    # One divide per channel (hoisted out of the elementwise path), exact.
    inv = 1.0 / (mx.astype(jnp.float32) - mn.astype(jnp.float32) + _EPS)
    scale = inv.astype(x.dtype)                     # (C, 1)
    o_ref[...] = ((x - mn) * scale).astype(o_ref.dtype)


def _reduce_minmax_kernel(x_ref, mn_ref, mx_ref, *, n_valid, tile_n):
    """Phase 1 of the tiled path: running per-channel min/max over column tiles."""
    j = pl.program_id(0)
    x = x_ref[...]                                  # (C, tile_n)

    if n_valid % tile_n == 0:
        x_for_min = x
        x_for_max = x
    else:
        # Mask the padded tail of the last tile (OOB block contents are undefined).
        col = jax.lax.broadcasted_iota(jnp.int32, x.shape, 1) + j * tile_n
        valid = col < n_valid
        x_for_min = jnp.where(valid, x, jnp.array(jnp.inf, x.dtype))
        x_for_max = jnp.where(valid, x, jnp.array(-jnp.inf, x.dtype))

    t_min = jnp.min(x_for_min, axis=-1, keepdims=True)   # (C, 1)
    t_max = jnp.max(x_for_max, axis=-1, keepdims=True)   # (C, 1)

    @pl.when(j == 0)
    def _():
        mn_ref[...] = t_min
        mx_ref[...] = t_max

    @pl.when(j > 0)
    def _():
        mn_ref[...] = jnp.minimum(mn_ref[...], t_min)
        mx_ref[...] = jnp.maximum(mx_ref[...], t_max)


def _apply_kernel(x_ref, mn_ref, mx_ref, o_ref):
    """Phase 2 of the tiled path: normalize one (C, tile_n) column tile."""
    x = x_ref[...]                                  # (C, tile_n)
    mn = mn_ref[...]                                # (C, 1)
    mx = mx_ref[...]                                # (C, 1)
    inv = 1.0 / (mx.astype(jnp.float32) - mn.astype(jnp.float32) + _EPS)
    scale = inv.astype(x.dtype)
    o_ref[...] = ((x - mn) * scale).astype(o_ref.dtype)


# ---------------------------------------------------------------------------
# Wrappers
# ---------------------------------------------------------------------------
def _round_down_to(v, m):
    return max(m, (v // m) * m)


def _round_up_to(v, m):
    return ((v + m - 1) // m) * m


def _minmax_single_block(x2d):
    C, N = x2d.shape
    return pl.pallas_call(
        _single_block_kernel,
        out_shape=jax.ShapeDtypeStruct((C, N), x2d.dtype),
        grid=(1,),
        in_specs=[pl.BlockSpec((C, N), lambda i: (0, 0))],
        out_specs=pl.BlockSpec((C, N), lambda i: (0, 0)),
        compiler_params=pltpu.CompilerParams(dimension_semantics=("arbitrary",)),
    )(x2d)


def _minmax_two_phase(x2d, *, tile_cols=None, vmem_budget_bytes=8 * 1024 * 1024):
    C, N = x2d.shape
    itemsize = jnp.dtype(x2d.dtype).itemsize

    if tile_cols is None:
        # ~2 live arrays (in + out), double-buffered -> 4x per grid step; keep well
        # under the 16 MiB scoped-VMEM floor (v5e) so this works on all generations.
        tile_cols = vmem_budget_bytes // (4 * C * itemsize)
    tile_cols = _round_down_to(int(tile_cols), 128)
    tile_cols = min(tile_cols, _round_up_to(N, 128))
    num_tiles = pl.cdiv(N, tile_cols)

    # Phase 1: per-channel min / max (sequential reduction over column tiles).
    reduce_kernel = functools.partial(
        _reduce_minmax_kernel, n_valid=N, tile_n=tile_cols)
    mn, mx = pl.pallas_call(
        reduce_kernel,
        out_shape=(jax.ShapeDtypeStruct((C, 1), x2d.dtype),
                   jax.ShapeDtypeStruct((C, 1), x2d.dtype)),
        grid=(num_tiles,),
        in_specs=[pl.BlockSpec((C, tile_cols), lambda j: (0, j))],
        out_specs=(pl.BlockSpec((C, 1), lambda j: (0, 0)),
                   pl.BlockSpec((C, 1), lambda j: (0, 0))),
        compiler_params=pltpu.CompilerParams(dimension_semantics=("arbitrary",)),
    )(x2d)

    # Phase 2: normalize (independent tiles -> "parallel" for v7x dual TCs).
    y2d = pl.pallas_call(
        _apply_kernel,
        out_shape=jax.ShapeDtypeStruct((C, N), x2d.dtype),
        grid=(num_tiles,),
        in_specs=[pl.BlockSpec((C, tile_cols), lambda j: (0, j)),
                  pl.BlockSpec((C, 1), lambda j: (0, 0)),
                  pl.BlockSpec((C, 1), lambda j: (0, 0))],
        out_specs=pl.BlockSpec((C, tile_cols), lambda j: (0, j)),
        compiler_params=pltpu.CompilerParams(dimension_semantics=("parallel",)),
    )(x2d, mn, mx)
    return y2d


def minmax_normalize(x, *, max_single_block_bytes=4 * 1024 * 1024, tile_cols=None):
    """Pallas implementation of the min-max normalization for x of shape (C, H, W).

    (For truly tiny inputs one would normally skip Pallas entirely and let XLA
    fuse the pure-JAX version; the Pallas path is kept unconditional here so the
    kernel itself is exercised.)
    """
    C, H, W = x.shape
    N = H * W
    x2d = x.reshape(C, N)  # lane-dense: last dim = H*W instead of W
    itemsize = jnp.dtype(x2d.dtype).itemsize

    if tile_cols is None and C * N * itemsize <= max_single_block_bytes:
        y2d = _minmax_single_block(x2d)
    else:
        y2d = _minmax_two_phase(x2d, tile_cols=tile_cols)
    return y2d.reshape(C, H, W)


def _reference(x):
    mn = jnp.min(x, axis=(1, 2), keepdims=True)
    mx = jnp.max(x, axis=(1, 2), keepdims=True)
    return (x - mn) / (mx - mn + _EPS)


# ---------------------------------------------------------------------------
# Self-test
# ---------------------------------------------------------------------------
if __name__ == "__main__":
    key = jax.random.PRNGKey(0)
    k1, k2 = jax.random.split(key)

    # Small shape consistent with the module input: (C, H, W) = (4, 16, 16).
    x_small = jax.random.uniform(k1, (4, 16, 16), dtype=jnp.float32,
                                 minval=0.0, maxval=255.0)
    out_small = jax.block_until_ready(minmax_normalize(x_small))
    ref_small = _reference(x_small)
    assert out_small.shape == x_small.shape and out_small.dtype == x_small.dtype
    assert jnp.allclose(out_small, ref_small, atol=1e-5, rtol=1e-5), \
        "single-block path mismatch vs reference"

    # Also exercise the tiled two-phase path (forced via explicit tile_cols),
    # including the masked non-divisible tail (N = 3600, tile = 512).
    x_tiled = jax.random.uniform(k2, (4, 60, 60), dtype=jnp.float32,
                                 minval=0.0, maxval=255.0)
    out_tiled = jax.block_until_ready(minmax_normalize(x_tiled, tile_cols=512))
    ref_tiled = _reference(x_tiled)
    assert out_tiled.shape == x_tiled.shape and out_tiled.dtype == x_tiled.dtype
    assert jnp.allclose(out_tiled, ref_tiled, atol=1e-5, rtol=1e-5), \
        "two-phase tiled path mismatch vs reference"

    print("KERNEL_OK")
</pallas_src>

<mosaic_0001>
module attributes {stable_mosaic.version = 11 : i64} {
  func.func @_single_block_kernel(%arg0: i32, %arg1: memref<4x256xf32, #tpu.memory_space<vmem>>, %arg2: memref<4x256xf32, #tpu.memory_space<vmem>>) attributes {dimension_semantics = [#tpu.dimension_semantics<arbitrary>], iteration_bounds = array<i64: 1>, scalar_prefetch = 0 : i64, scratch_operands = 0 : i64, tpu.core_type = #tpu.core_type<tc>, window_params = [{pipeline_mode = #tpu.pipeline_mode<synchronous>, transform_indices = @transform_0, window_bounds = array<i64: 4, 256>}, {pipeline_mode = #tpu.pipeline_mode<synchronous>, transform_indices = @transform_1, window_bounds = array<i64: 4, 256>}]} {
    %c0 = arith.constant 0 : index
    %c0_0 = arith.constant 0 : index
    %0 = vector.load %arg1[%c0, %c0_0] : memref<4x256xf32, #tpu.memory_space<vmem>>, vector<4x256xf32>
    %cst = arith.constant dense<0x7F800000> : vector<4xf32>
    %1 = vector.multi_reduction <minimumf>, %0, %cst [1] : vector<4x256xf32> to vector<4xf32>
    %2 = vector.shape_cast %1 : vector<4xf32> to vector<4x1xf32>
    %cst_1 = arith.constant dense<0xFF800000> : vector<4xf32>
    %3 = vector.multi_reduction <maximumf>, %0, %cst_1 [1] : vector<4x256xf32> to vector<4xf32>
    %4 = vector.shape_cast %3 : vector<4xf32> to vector<4x1xf32>
    %5 = arith.subf %4, %2 : vector<4x1xf32>
    %cst_2 = arith.constant 9.99999997E-7 : f32
    %6 = vector.broadcast %cst_2 : f32 to vector<4x1xf32>
    %7 = arith.addf %5, %6 : vector<4x1xf32>
    %cst_3 = arith.constant 1.000000e+00 : f32
    %8 = vector.broadcast %cst_3 : f32 to vector<4x1xf32>
    %9 = arith.divf %8, %7 : vector<4x1xf32>
    %10 = vector.broadcast %2 : vector<4x1xf32> to vector<4x256xf32>
    %11 = arith.subf %0, %10 : vector<4x256xf32>
    %12 = vector.broadcast %9 : vector<4x1xf32> to vector<4x256xf32>
    %13 = arith.mulf %11, %12 : vector<4x256xf32>
    %c0_4 = arith.constant 0 : index
    %c0_5 = arith.constant 0 : index
    %14 = vector.load %arg2[%c0_4, %c0_5] : memref<4x256xf32, #tpu.memory_space<vmem>>, vector<4x256xf32>
    tpu.vector_store %arg2[%c0_4, %c0_5], %13 {strides = array<i32>} : memref<4x256xf32, #tpu.memory_space<vmem>>, vector<4x256xf32>,
    return
  }
  func.func @transform_0(%arg0: i32) -> (i32, i32) {
    %c0_i32 = arith.constant 0 : i32
    %c0_i32_0 = arith.constant 0 : i32
    %c0_i32_1 = arith.constant 0 : i32
    return %c0_i32, %c0_i32_0 : i32, i32
  }
  func.func @transform_1(%arg0: i32) -> (i32, i32) {
    %c0_i32 = arith.constant 0 : i32
    %c0_i32_0 = arith.constant 0 : i32
    %c0_i32_1 = arith.constant 0 : i32
    return %c0_i32, %c0_i32_0 : i32, i32
  }
}

</mosaic_0001>

<bundles_post_ra>
// kernel: tpu_custom_call.1
= control target key start
LH: loop header
LB: loop body
LE: loop exit
PB: predicated region body
PF: predicated region fallthrough
CT: control target
= control target key end

     0   :  { %6 = vsyncpa [#allocation3], 0  ;;  %s167_s0 = inlined_call_operand.hbm [shape: f32[4,256], index: 0, kind: input, shape index: {}]   ;;  %s168_s1 = inlined_call_operand.hbm [shape: f32[4,256], index: 1, kind: output, shape index: {}]  }
   0x1   :  { %7 = vsyncpa [#allocation4], 0  ;;  %s130_s6 = smov [#allocation2]   ;;  %s82_s10 = scalar_lea.hbm %s167_s0, 128 }
   0x2   :  { %s14_s7 = sshll.u32 %s130_s6, 4  ;;  %p83_p0 = scmp.ne.s32.totalorder %s167_s0, %s82_s10  ;;  %s15_s7 = int_to_ptr.vmem [resolvable:$true] %s14_s7 }
   0x3   :  { %p86_p1 = scmp.lt.u32.totalorder %s82_s10, %s167_s0 }
   0x5   :  { %p88_p2 = pnand %p86_p1, %p83_p0 }
   0x7   :  { %91 = shalt.err (!%p88_p2)
}
   0x8   :  { %s92_s15 = scalar_lea.vmem %s15_s7, 128  ;;  %p97_p4 = scmp.lt.s32.totalorder %s15_s7, %s15_s7 }
   0x9   :  { %p93_p3 = scmp.ne.s32.totalorder %s15_s7, %s92_s15  ;;  %p98_p5 = scmp.lt.s32.totalorder %s92_s15, %s92_s15 }
   0xb   :  { %p99_p6 = por %p98_p5, %p97_p4 }
   0xd   :  { %p100_p7 = pnand %p99_p6, %p93_p3 }
   0xf   :  { %103 = shalt.err (!%p100_p7)
}
  0x10   :  { %17 = dma.hbm_to_vmem [thread:$0]  %s167_s0, 128, %s15_s7, [#allocation3]  }
  0x11   :  { %126 = dma.done.wait [#allocation3], 128  }
  0x12   :  { %127 = vsyncadd [#allocation3], 4294967168  ;;  %vm25_vm0 = vcmask 1043456   ;;  %v21_v0 = vld [vmem:[#allocation2] sm:$0xff]  ;;  %v131_v9 = vmov 839922192   ;;  %v44_v11 = vlaneseq }
  0x13   :  { %v23_v1 = vcombine.high %v21_v0, %v21_v0  ;;  %v26_v2 = vsel %vm25_vm0, %v21_v0, inf  ;;  %v31_v4 = vsel %vm25_vm0, %v21_v0, -inf  ;;  %v42_v10 = vunpack.c.l.s4 %v131_v9  ;;  %s132_s0 = smov [#allocation5]  }
  0x14   :  { %v45_v16 = vshrl.u32 %v44_v11, 7  ;;  %s67_s18 = sshll.u32 %s132_s0, 4  ;;  %s68_s18 = int_to_ptr.vmem [resolvable:$true] %s67_s18 }
  0x15   :  { %v27_v3 = vsel %vm25_vm0, %v23_v1, inf  ;;  %v32_v5 = vsel %vm25_vm0, %v23_v1, -inf  ;;  %v43_v15 = vunpack.c.0.s8 %v42_v10  ;;  %s104_s19 = scalar_lea.vmem %s68_s18, 128  ;;  %p109_p9 = scmp.lt.s32.totalorder %s68_s18, %s68_s18 }
  0x16   :  { %v28_v6 = vmin.f32 %v26_v2, %v27_v3  ;;  %v33_v7 = vmax.f32 %v31_v4, %v32_v5  ;;  %p105_p8 = scmp.ne.s32.totalorder %s68_s18, %s104_s19  ;;  %p110_p10 = scmp.lt.s32.totalorder %s104_s19, %s104_s19 }
  0x17   :  { %v46_v17 = vsub.s32 %v43_v15, %v45_v16 }
  0x18   :  { %29 = vmin.xlane.f32.xlu0 %v28_v6  ;;  %p111_p11 = por %p110_p10, %p109_p9 }
  0x1a   :  { %p112_p12 = pnand %p111_p11, %p105_p8 }
  0x1c   :  { %34 = vmax.xlane.f32.xlu0 %v33_v7 }
  0xa5   :  { %v30_v8 = vpop.xlane.xlu0 %29 }
  0xa6   :  { %v47_v18 = vrot.slane %v30_v8, %v46_v17 }
  0xa8   :  { %v49_v20 = vsub.f32 %v21_v0, %v47_v18 }
  0xa9   :  { %v35_v12 = vpop.xlane.xlu0 %34 }
  0xaa   :  { %v36_v13 = vsub.f32 %v35_v12, %v30_v8 }
  0xac   :  { %v37_v14 = vadd.f32 1e-06, %v36_v13 }
  0xae   :  { %80 = vrcp.f32 %v37_v14 }
  0xb8   :  { %v81_v19 = vpop.eup %80 }
  0xb9   :  { %v57_v21 = vrot.slane %v81_v19, %v46_v17 }
  0xbb   :  { %v59_v22 = vmul.f32 %v57_v21, %v49_v20 }
  0xbd   :  { %60 = vst [vmem:[#allocation5] sm:$0xff] %v59_v22 }
  0xbe   :  { %115 = shalt.err (!%p112_p12)
}
  0xbf   :  { %s116_s22 = scalar_lea.hbm %s168_s1, 128 }
  0xc0   :  { %p117_p13 = scmp.ne.s32.totalorder %s168_s1, %s116_s22  ;;  %p120_p0 = scmp.lt.u32.totalorder %s116_s22, %s168_s1 }
  0xc2   :  { %p122_p1 = pnand %p120_p0, %p117_p13 }
  0xc4   :  { %125 = shalt.err (!%p122_p1)
}
  0xc5   :  { %70 = dma.vmem_to_hbm [thread:$0]  %s68_s18, 128, %s168_s1, [#allocation4]  }
  0xc6   :  { %128 = dma.done.wait [#allocation4], 128  }
  0xc7   :  { %129 = vsyncadd [#allocation4], 4294967168 }
  0xc8   :  { %74 = vsyncpa [#allocation3], 1 }
  0xc9   :  { %75 = vsyncpa [#allocation4], 1 }

</bundles_post_ra>
